<compile_context>
chip_gen: v5e
topology: v5e:2x2
jax: 0.10.0
libtpu: 0.0.40
codegen_flags: <defaults>
</compile_context>

<pallas_src>
import jax
import jax.numpy as jnp
from jax.experimental import pallas as pl
from jax.experimental.pallas import tpu as pltpu


def _time_feature_embed_kernel(x_ref, w_ref, o_ref):
    # x_ref : (TM, K)   VMEM tile of (possibly row-packed) flattened inputs
    # w_ref : (K, N)    resident weight tile (constant index_map)
    # o_ref : (TM, N)   lane-dense (packed) or exact-d_model (fallback) output tile
    o_ref[...] = jnp.dot(
        x_ref[...], w_ref[...], preferred_element_type=jnp.float32
    ).astype(o_ref.dtype)


def prepare_time_feature_weight(weight):
    """Do the (one-time, module-init) weight preparation.

    weight: (d_model, d_inp) like nn.Linear.weight (bias=False).
    Returns (w_kernel, pack):
      pack > 1  -> w_kernel is the block-diagonal (pack*d_inp, 128) matrix that lets
                   `pack` logical rows share one lane-dense 128-wide output row.
      pack == 1 -> w_kernel is simply weight.T (d_inp, d_model).
    """
    d_model, d_inp = weight.shape
    wt = weight.T  # (d_inp, d_model)
    if d_model < 128 and 128 % d_model == 0:
        pack = 128 // d_model
        w_kernel = jnp.kron(jnp.eye(pack, dtype=weight.dtype), wt)  # (pack*d_inp, 128)
        return w_kernel, pack
    return wt, 1


def _choose_tm(m_rows, n_out, itemsize):
    """Pick the M-tile: big enough to amortize ~0.35us/step, small enough for VMEM."""
    # Cap so (in + out) double-buffered stays under ~12 MiB (below v5e's 16 MiB default).
    cap = max(256, ((12 << 20) // (2 * itemsize * max(n_out, 1))) // 8 * 8)
    if m_rows <= min(1024, cap):
        return m_rows  # tiny problem: one full-extent step
    target = min(2048, cap)
    steps = max(4, pl.cdiv(m_rows, target))
    if steps % 2:  # even step count -> both v7x TensorCores get work on the parallel axis
        steps += 1
    return max(8, ((pl.cdiv(m_rows, steps) + 7) // 8) * 8)


def time_feature_embedding(x, w_kernel, pack=1):
    """x: (B, L, d_inp); (w_kernel, pack) from prepare_time_feature_weight(weight)."""
    B, L, d_inp = x.shape
    d_model = w_kernel.shape[1] // pack
    M = B * L

    p = pack
    if p > 1 and M % p != 0:
        # Can't row-pack this M: recover the single unpacked block of the
        # block-diagonal weight and fall back to exact-width (masked-vst) stores.
        w_kernel = w_kernel[:d_inp, :d_model]
        p = 1

    m_rows = M // p
    k_in = p * d_inp
    n_out = p * d_model

    # Free row-major reshapes (no data movement): packing p rows of d_inp into one
    # row of p*d_inp, and later unpacking p*d_model back to p rows of d_model.
    x2d = x.reshape(m_rows, k_in)

    tm = _choose_tm(m_rows, n_out, jnp.dtype(x.dtype).itemsize)
    grid = (pl.cdiv(m_rows, tm),)

    out2d = pl.pallas_call(
        _time_feature_embed_kernel,
        out_shape=jax.ShapeDtypeStruct((m_rows, n_out), x.dtype),
        grid_spec=pltpu.PrefetchScalarGridSpec(
            num_scalar_prefetch=0,
            grid=grid,
            in_specs=[
                # x tile marches along M
                pl.BlockSpec((tm, k_in), lambda i: (i, 0)),
                # weight: constant block index -> DMA'd once, resident in VMEM
                pl.BlockSpec((k_in, n_out), lambda i: (0, 0)),
            ],
            out_specs=pl.BlockSpec((tm, n_out), lambda i: (i, 0)),
        ),
        compiler_params=pltpu.CompilerParams(
            # M tiles are independent -> shard across TensorCores where available.
            dimension_semantics=("parallel",)
        ),
    )(x2d, w_kernel)

    return out2d.reshape(B, L, d_model)


if __name__ == "__main__":
    # disting='1h' -> freq 'h' -> d_inp = 3
    d_inp = 3
    d_model = 32
    B, L = 2, 8

    key = jax.random.PRNGKey(0)
    kx, kw, kx2, kx3 = jax.random.split(key, 4)

    x = jax.random.normal(kx, (B, L, d_inp), dtype=jnp.float32)
    # deterministic init mimicking nn.Linear default (uniform in +/- 1/sqrt(d_inp))
    bound = 1.0 / jnp.sqrt(jnp.float32(d_inp))
    weight = jax.random.uniform(
        kw, (d_model, d_inp), dtype=jnp.float32, minval=-bound, maxval=bound
    )

    # One-time weight prep (module init), reused across forwards.
    w_kernel, pack = prepare_time_feature_weight(weight)

    # 1) Small demo shape (lane-packed path, single grid step).
    out = time_feature_embedding(x, w_kernel, pack)
    out = jax.block_until_ready(out)
    ref = jnp.einsum("bld,md->blm", x, weight)
    assert out.shape == (B, L, d_model)
    assert jnp.allclose(out, ref, atol=1e-5, rtol=1e-5)

    # 2) M not divisible by pack and not divisible by the tile -> fallback path with
    #    remainder-tile masking (locks in the OOB-padding correctness concern).
    B2, L2 = 3, 347  # M = 1041
    x2 = jax.random.normal(kx2, (B2, L2, d_inp), dtype=jnp.float32)
    out2 = jax.block_until_ready(time_feature_embedding(x2, w_kernel, pack))
    ref2 = jnp.einsum("bld,md->blm", x2, weight)
    assert jnp.allclose(out2, ref2, atol=1e-5, rtol=1e-5)

    # 3) Larger M divisible by pack -> packed, multi-step pipelined grid.
    B3, L3 = 4, 2048  # M = 8192, m_rows = 2048, grid = 4
    x3 = jax.random.normal(kx3, (B3, L3, d_inp), dtype=jnp.float32)
    out3 = jax.block_until_ready(time_feature_embedding(x3, w_kernel, pack))
    ref3 = jnp.einsum("bld,md->blm", x3, weight)
    assert jnp.allclose(out3, ref3, atol=1e-5, rtol=1e-5)

    print("KERNEL_OK")
</pallas_src>

<mosaic_0001>
module attributes {stable_mosaic.version = 11 : i64} {
  func.func @_time_feature_embed_kernel(%arg0: i32, %arg1: memref<4x12xf32, #tpu.memory_space<vmem>>, %arg2: memref<12x128xf32, #tpu.memory_space<vmem>>, %arg3: memref<4x128xf32, #tpu.memory_space<vmem>>) attributes {dimension_semantics = [#tpu.dimension_semantics<parallel>], iteration_bounds = array<i64: 1>, scalar_prefetch = 0 : i64, scratch_operands = 0 : i64, tpu.core_type = #tpu.core_type<tc>, window_params = [{transform_indices = @transform_0, window_bounds = array<i64: 4, 12>}, {pipeline_mode = #tpu.pipeline_mode<synchronous>, transform_indices = @transform_1, window_bounds = array<i64: 12, 128>}, {transform_indices = @transform_2, window_bounds = array<i64: 4, 128>}]} {
    %c0 = arith.constant 0 : index
    %c0_0 = arith.constant 0 : index
    %0 = vector.load %arg1[%c0, %c0_0] : memref<4x12xf32, #tpu.memory_space<vmem>>, vector<4x12xf32>
    %c0_1 = arith.constant 0 : index
    %c0_2 = arith.constant 0 : index
    %1 = vector.load %arg2[%c0_1, %c0_2] : memref<12x128xf32, #tpu.memory_space<vmem>>, vector<12x128xf32>
    %cst = arith.constant dense<0.000000e+00> : vector<4x128xf32>
    %2 = tpu.matmul %0, %1, %cst {dimension_numbers = #tpu.dot_dimension_numbers<[1], [0], [0], [1], [0, 0, 1, 1], [], []>} : vector<4x12xf32>, vector<12x128xf32>, vector<4x128xf32> -> vector<4x128xf32>
    %c0_3 = arith.constant 0 : index
    %c0_4 = arith.constant 0 : index
    %3 = vector.load %arg3[%c0_3, %c0_4] : memref<4x128xf32, #tpu.memory_space<vmem>>, vector<4x128xf32>
    tpu.vector_store %arg3[%c0_3, %c0_4], %2 {strides = array<i32>} : memref<4x128xf32, #tpu.memory_space<vmem>>, vector<4x128xf32>,
    return
  }
  func.func @transform_0(%arg0: i32) -> (i32, i32) {
    %c0_i32 = arith.constant 0 : i32
    %c0_i32_0 = arith.constant 0 : i32
    return %arg0, %c0_i32 : i32, i32
  }
  func.func @transform_1(%arg0: i32) -> (i32, i32) {
    %c0_i32 = arith.constant 0 : i32
    %c0_i32_0 = arith.constant 0 : i32
    %c0_i32_1 = arith.constant 0 : i32
    return %c0_i32, %c0_i32_0 : i32, i32
  }
  func.func @transform_2(%arg0: i32) -> (i32, i32) {
    %c0_i32 = arith.constant 0 : i32
    %c0_i32_0 = arith.constant 0 : i32
    return %arg0, %c0_i32 : i32, i32
  }
}

</mosaic_0001>

<bundles_post_ra>
// kernel: tpu_custom_call.1
= control target key start
LH: loop header
LB: loop body
LE: loop exit
PB: predicated region body
PF: predicated region fallthrough
CT: control target
= control target key end

     0   :  { %7 = vsyncpa [#allocation3], 0  ;;  %s206_s0 = inlined_call_operand.hbm [shape: f32[4,12], index: 0, kind: input, shape index: {}]   ;;  %s207_s1 = inlined_call_operand.hbm [shape: f32[12,128], index: 1, kind: input, shape index: {}]   ;;  %s208_s2 = inlined_call_operand.hbm [shape: f32[4,128], index: 2, kind: output, shape index: {}]  }
   0x1   :  { %8 = vsyncpa [#allocation6], 0 }
   0x2   :  { %9 = vsyncpa [#allocation4], 0  ;;  %s15_s11 = sshll.u32 %s206_s0, 4  ;;  %s177_s12 = smov [#allocation2]   ;;  %s16_s11 = int_to_ptr.hbm [resolvable:$true] %s15_s11 }
   0x3   :  { %s17_s13 = sshll.u32 %s177_s12, 4  ;;  %s25_s16 = sshll.u32 %s207_s1, 4  ;;  %s18_s13 = int_to_ptr.vmem [resolvable:$true] %s17_s13  ;;  %s26_s16 = int_to_ptr.hbm [resolvable:$true] %s25_s16 }
   0x4   :  { %20 = dma.hbm_to_vmem [thread:$0]  %s16_s11, 64, %s18_s13, [#allocation3]  }
   0x5   :  { %s178_s17 = smov [#allocation5]   ;;  %s179_s19 = smov 128  }
   0x6   :  { %s27_s18 = sshll.u32 %s178_s17, 4  ;;  %s180_s20 = smov 8   ;;  %s28_s18 = int_to_ptr.vmem [resolvable:$true] %s27_s18 }
   0x7   :  { %33 = dma.hbm_to_vmem [thread:$0]  %s26_s16, 256, %s28_s18, [#allocation6], %s179_s19, %s179_s19, %s180_s20  }
   0x8   :  { %171 = dma.done.wait [#allocation3], 64  }
   0x9   :  { %172 = vsyncadd [#allocation3], 4294967232 }
   0xa   :  { %173 = dma.done.wait [#allocation6], 256  }
   0xb   :  { %174 = vsyncadd [#allocation6], 4294967040  ;;  %vm49_vm0 = vcmask 1043456   ;;  %v44_v0 = vld [vmem:[#allocation5 + $0x8] sm:$0xf]  ;;  %v43_v1 = vld [vmem:[#allocation5] sm:$0xff] }
   0xc   :  { %92 = vmatpush.msk.msra.mxu0 %vm49_vm0, %v44_v0  ;;  %v42_v2 = vld [vmem:[#allocation2] sm:$0xf]  ;;  %vm45_vm1 = vcmask 97280   ;;  %s181_s0 = smov [#allocation7]   ;;  %s81_s23 = sshll.u32 %s208_s2, 4  ;;  %s82_s23 = int_to_ptr.hbm [resolvable:$true] %s81_s23 }
   0xd   :  { %s79_s1 = sshll.u32 %s181_s0, 4  ;;  %s80_s1 = int_to_ptr.vmem [resolvable:$true] %s79_s1 }
   0xe   :  { %68 = vmatpush.msra.mxu0 %v43_v1 }
   0xf   :  { %93 = vmatmul.msk.f32.vlgmr.msra.gmra.mxu0 %vm45_vm1, %v42_v2 }
  0x8c   :  { %v70_v3 = vpop.f32.mrf.mxu0 }
  0x8d   :  { %73 = vst [vmem:[#allocation7] sm:$0xf] %v70_v3 }
  0x8e   :  { %84 = dma.vmem_to_hbm [thread:$0]  %s80_s1, 64, %s82_s23, [#allocation4]  }
  0x8f   :  { %175 = dma.done.wait [#allocation4], 64  }
  0x90   :  { %176 = vsyncadd [#allocation4], 4294967232 }
  0x91   :  { %89 = vsyncpa [#allocation3], 1 }
  0x92   :  { %90 = vsyncpa [#allocation6], 1 }
  0x93   :  { %91 = vsyncpa [#allocation4], 1 }

</bundles_post_ra>
